<compile_context>
chip_gen: v7x
topology: tpu7x:2x2x1
jax: 0.10.0
libtpu: 0.0.40
codegen_flags: <defaults>
</compile_context>

<pallas_src>
import jax
import jax.numpy as jnp
from jax import lax
from jax.experimental import pallas as pl
from jax.experimental.pallas import tpu as pltpu


def vision_prompt_kernel(patches_ref, w_ref, clspos_ref, pos1_ref, out_ref):
    """One grid step = TILE_B images, one MXU matmul.

    patches_ref: [TILE_B, P, K]   flattened image patches (matmul dtype)
    w_ref:       [K, D]           conv1 weight as a matmul weight (matmul dtype)
    clspos_ref:  [1, D]           class_embedding + positional_embedding[0] (out dtype)
    pos1_ref:    [P, D]           positional_embedding[1:] (f32)
    out_ref:     [TILE_B, P+1, D] output tokens
    """
    tile_b, P, K = patches_ref.shape
    D = w_ref.shape[1]

    # Collapse (B, P) into one M axis: a single [tile_b*P, K] x [K, D] matmul
    # fills the MXU instead of tile_b tiny M=P matmuls.  P is a multiple of the
    # 8-row sublane tile, so both reshapes are free (no relayout).
    flat = patches_ref[...].reshape(tile_b * P, K)
    emb = jnp.dot(flat, w_ref[...], preferred_element_type=jnp.float32)   # f32 acc
    emb = emb.reshape(tile_b, P, D) + pos1_ref[...][None]                 # f32 pos add

    # One broadcast store for the class-token row of every image in the tile...
    out_ref[:, 0:1, :] = jnp.broadcast_to(
        clspos_ref[...].reshape(1, 1, D), (tile_b, 1, D))
    # ...and one block store for the patch rows.  NOTE: rows 1..P sit at sublane
    # offset 1 inside the (P+1)-row block, so this is a masked/shifted store —
    # cheap at P=16 / D=128.
    # TODO(synk): at real ViT sizes (P=196-256, D>=768) split the output into an
    # offset-0-aligned [B, P, D] patches array plus a wrapper-side cls row.
    out_ref[:, 1:, :] = emb.astype(out_ref.dtype)


def _vmem_budgets():
    """Generation-aware VMEM budgets (v7x: 64 MiB per TC; v5e/v6e: 128 MiB)."""
    try:
        cap = int(pltpu.get_tpu_info().vmem_capacity_bytes)
    except Exception:
        cap = 64 * 1024 * 1024          # conservative fallback: v7x per-TC VMEM
    pick_budget = int(cap * 0.40)       # ~25 MiB on v7x, ~51 MiB on v5e/v6e
    vmem_limit = int(cap * 0.50)        # ~32 MiB on v7x, ~64 MiB on v5e/v6e
    return pick_budget, vmem_limit


def _pick_tile_b(B, P, K, D, in_bytes, out_bytes, vmem_budget):
    """Images per grid step, derived purely from the VMEM budget (no hard cap)."""
    # Grid-invariant operands (weight + pos1 + cls row) are still double-buffered
    # by the default pipeline, hence the 2x on `resident`.
    resident = 2 * (K * D * in_bytes + P * D * 4 + D * out_bytes)
    per_image = P * K * in_bytes + (P + 1) * D * out_bytes   # in block + out block
    avail = max(vmem_budget - resident, per_image)
    tile_b = max(1, avail // (2 * per_image))                # 2x: double-buffered pipeline
    tile_b = int(min(tile_b, B))
    if B >= 2:
        # Keep >= 2 grid steps so v7x's two TensorCores both get work
        # (no cost on v5e/v6e, where the grid is a sequential loop anyway).
        tile_b = min(tile_b, pl.cdiv(B, 2))
    return max(int(tile_b), 1)


def vision_prompt_learner_forward(x, conv1_w, class_embedding,
                                  positional_embedding, ctx,
                                  matmul_dtype=None):
    """x: [B, C, H, W] (NCHW, like PyTorch).  Returns (tokens, ctx_expanded).

    matmul_dtype: dtype for the patch-embedding matmul operands.  Pass
    jnp.bfloat16 for production (MXU-native on all generations; f32 accumulation
    and f32 positional adds are kept either way).
    """
    B, C, H, W = x.shape
    D, _, p, _ = conv1_w.shape                    # [width, C, p, p]
    gh, gw = H // p, W // p
    P = gh * gw
    K = C * p * p
    out_dtype = x.dtype
    if matmul_dtype is None:
        matmul_dtype = x.dtype

    # --- glue: patch extraction (pure data movement; one fused XLA copy under jit) ---
    # Feature axis flattened (c, kh, kw) to match PyTorch conv weight layout.
    # TODO(synk): fold this rearrangement into the pipeline (BlockSpec over
    # row-of-patch slabs of the raw NCHW input) to remove the extra HBM round
    # trip — biggest relative win on v5e's ~0.8 TB/s HBM.
    patches = x.reshape(B, C, gh, p, gw, p)
    patches = patches.transpose(0, 2, 4, 1, 3, 5).reshape(B, P, K)
    patches = patches.astype(matmul_dtype)

    # --- parameter prep (hoisted out of the grid; one-time under jit / at load) ---
    w_mat = conv1_w.reshape(D, K).T.astype(matmul_dtype)            # [K, D]
    pos_f32 = positional_embedding.astype(jnp.float32)              # [P+1, D]
    clspos = (class_embedding.astype(jnp.float32) + pos_f32[0]
              ).reshape(1, D).astype(out_dtype)                     # [1, D] pre-folded row
    pos1 = pos_f32[1:]                                              # [P, D] f32

    # --- tiling: TILE_B images per grid step (VMEM-derived, generation-aware) ---
    in_bytes = jnp.dtype(matmul_dtype).itemsize
    out_bytes = jnp.dtype(out_dtype).itemsize
    pick_budget, vmem_limit = _vmem_budgets()
    tile_b = _pick_tile_b(B, P, K, D, in_bytes, out_bytes, pick_budget)
    b_pad = pl.cdiv(B, tile_b) * tile_b
    if b_pad != B:
        patches = jnp.pad(patches, ((0, b_pad - B), (0, 0), (0, 0)))
    grid = (b_pad // tile_b,)

    # TODO(synk): mark the grid-invariant operands (w_mat, clspos, pos1) with
    # pipeline_mode=pl.Buffered(1) to single-buffer them; negligible at these
    # sizes, worth a few MiB at real ViT sizes on v7x's 64 MiB VMEM.
    tokens = pl.pallas_call(
        vision_prompt_kernel,
        out_shape=jax.ShapeDtypeStruct((b_pad, P + 1, D), out_dtype),
        grid_spec=pltpu.PrefetchScalarGridSpec(
            num_scalar_prefetch=0,
            grid=grid,
            in_specs=[
                pl.BlockSpec((tile_b, P, K), lambda i: (i, 0, 0)),
                pl.BlockSpec((K, D), lambda i: (0, 0)),
                pl.BlockSpec((1, D), lambda i: (0, 0)),
                pl.BlockSpec((P, D), lambda i: (0, 0)),
            ],
            out_specs=pl.BlockSpec((tile_b, P + 1, D), lambda i: (i, 0, 0)),
        ),
        compiler_params=pltpu.CompilerParams(
            dimension_semantics=("parallel",),
            vmem_limit_bytes=vmem_limit),
    )(patches, w_mat, clspos, pos1)

    if b_pad != B:
        tokens = tokens[:B]

    # ctx.unsqueeze(0).expand(B, ...) -- pure broadcast, kept as glue.
    ctx_expanded = jnp.broadcast_to(ctx[None], (B,) + ctx.shape)
    return tokens, ctx_expanded


if __name__ == "__main__":
    # Small shapes consistent with the module's forward (lane-friendly D=128, P=16).
    B, C, H, W = 2, 3, 32, 32        # NCHW input
    patch = 8                        # conv1 kernel == stride
    width = 128                      # ctx_dim == visual width
    layer_p, n_pro = 2, 4            # prompt layers / number of prompts
    gh, gw = H // patch, W // patch
    P = gh * gw
    dtype = jnp.float32

    key = jax.random.PRNGKey(0)
    k_x, k_w, k_cls, k_pos, k_ctx = jax.random.split(key, 5)

    x = jax.random.normal(k_x, (B, C, H, W), dtype=dtype)
    conv1_w = jax.random.normal(k_w, (width, C, patch, patch), dtype=dtype) * 0.02
    class_embedding = jax.random.normal(k_cls, (width,), dtype=dtype) * 0.02
    positional_embedding = jax.random.normal(
        k_pos, (P + 1, width), dtype=dtype) * 0.02
    ctx = jax.random.normal(k_ctx, (layer_p, n_pro, width), dtype=dtype) * 0.02

    fwd = jax.jit(vision_prompt_learner_forward, static_argnames=("matmul_dtype",))

    tokens, ctx_out = fwd(x, conv1_w, class_embedding, positional_embedding, ctx)
    jax.block_until_ready(tokens)
    jax.block_until_ready(ctx_out)

    # Reference check against plain-JAX conv (NCHW, stride == kernel, no bias).
    ref_conv = lax.conv_general_dilated(
        x, conv1_w, window_strides=(patch, patch), padding="VALID",
        dimension_numbers=("NCHW", "OIHW", "NCHW"))               # [B, width, gh, gw]
    ref = ref_conv.reshape(B, width, -1).transpose(0, 2, 1)       # [B, P, width]
    ref = jnp.concatenate(
        [jnp.broadcast_to(class_embedding[None, None, :], (B, 1, width)), ref],
        axis=1)
    ref = ref + positional_embedding[None]
    ref_ctx = jnp.broadcast_to(ctx[None], (B,) + ctx.shape)

    assert tokens.shape == (B, P + 1, width)
    assert ctx_out.shape == (B, layer_p, n_pro, width)
    assert jnp.allclose(tokens, ref, atol=1e-5, rtol=1e-5)
    assert jnp.allclose(ctx_out, ref_ctx)

    # Production path: bf16 matmul operands, f32 accumulation / pos-cls adds.
    tokens_bf16, _ = fwd(x, conv1_w, class_embedding, positional_embedding, ctx,
                         matmul_dtype=jnp.bfloat16)
    jax.block_until_ready(tokens_bf16)
    assert jnp.allclose(tokens_bf16, ref, atol=3e-2, rtol=3e-2)

    print("KERNEL_OK")
</pallas_src>

<mosaic_0001>
module attributes {stable_mosaic.version = 11 : i64} {
  func.func @vision_prompt_kernel(%arg0: i32, %arg1: memref<1x16x192xf32, #tpu.memory_space<vmem>>, %arg2: memref<192x128xf32, #tpu.memory_space<vmem>>, %arg3: memref<1x128xf32, #tpu.memory_space<vmem>>, %arg4: memref<16x128xf32, #tpu.memory_space<vmem>>, %arg5: memref<1x17x128xf32, #tpu.memory_space<vmem>>) attributes {dimension_semantics = [#tpu.dimension_semantics<parallel>], iteration_bounds = array<i64: 2>, scalar_prefetch = 0 : i64, scratch_operands = 0 : i64, tpu.core_type = #tpu.core_type<tc>, window_params = [{transform_indices = @transform_0, window_bounds = array<i64: 1, 16, 192>}, {pipeline_mode = #tpu.pipeline_mode<synchronous>, transform_indices = @transform_1, window_bounds = array<i64: 192, 128>}, {pipeline_mode = #tpu.pipeline_mode<synchronous>, transform_indices = @transform_2, window_bounds = array<i64: 1, 128>}, {pipeline_mode = #tpu.pipeline_mode<synchronous>, transform_indices = @transform_3, window_bounds = array<i64: 16, 128>}, {transform_indices = @transform_4, window_bounds = array<i64: 1, 17, 128>}]} {
    %c0 = arith.constant 0 : index
    %c0_0 = arith.constant 0 : index
    %c0_1 = arith.constant 0 : index
    %0 = vector.load %arg1[%c0, %c0_0, %c0_1] : memref<1x16x192xf32, #tpu.memory_space<vmem>>, vector<1x16x192xf32>
    %1 = vector.shape_cast %0 : vector<1x16x192xf32> to vector<16x192xf32>
    %c0_2 = arith.constant 0 : index
    %c0_3 = arith.constant 0 : index
    %2 = vector.load %arg2[%c0_2, %c0_3] : memref<192x128xf32, #tpu.memory_space<vmem>>, vector<192x128xf32>
    %cst = arith.constant dense<0.000000e+00> : vector<16x128xf32>
    %3 = tpu.matmul %1, %2, %cst {dimension_numbers = #tpu.dot_dimension_numbers<[1], [0], [0], [1], [0, 0, 1, 1], [], []>} : vector<16x192xf32>, vector<192x128xf32>, vector<16x128xf32> -> vector<16x128xf32>
    %4 = vector.shape_cast %3 : vector<16x128xf32> to vector<1x16x128xf32>
    %c0_4 = arith.constant 0 : index
    %c0_5 = arith.constant 0 : index
    %5 = vector.load %arg4[%c0_4, %c0_5] : memref<16x128xf32, #tpu.memory_space<vmem>>, vector<16x128xf32>
    %6 = vector.shape_cast %5 : vector<16x128xf32> to vector<1x16x128xf32>
    %7 = arith.addf %4, %6 : vector<1x16x128xf32>
    %c0_6 = arith.constant 0 : index
    %c0_7 = arith.constant 0 : index
    %8 = vector.load %arg3[%c0_6, %c0_7] : memref<1x128xf32, #tpu.memory_space<vmem>>, vector<1x128xf32>
    %9 = vector.shape_cast %8 : vector<1x128xf32> to vector<1x1x128xf32>
    %c0_8 = arith.constant 0 : index
    %c0_9 = arith.constant 0 : index
    %c0_10 = arith.constant 0 : index
    %10 = vector.load %arg5[%c0_8, %c0_9, %c0_10] : memref<1x17x128xf32, #tpu.memory_space<vmem>>, vector<1x1x128xf32>
    tpu.vector_store %arg5[%c0_8, %c0_9, %c0_10], %9 {strides = array<i32>} : memref<1x17x128xf32, #tpu.memory_space<vmem>>, vector<1x1x128xf32>,
    %c0_11 = arith.constant 0 : index
    %c1 = arith.constant 1 : index
    %c0_12 = arith.constant 0 : index
    %11 = vector.load %arg5[%c0_11, %c1, %c0_12] : memref<1x17x128xf32, #tpu.memory_space<vmem>>, vector<1x16x128xf32>
    tpu.vector_store %arg5[%c0_11, %c1, %c0_12], %7 {strides = array<i32>} : memref<1x17x128xf32, #tpu.memory_space<vmem>>, vector<1x16x128xf32>,
    return
  }
  func.func @transform_0(%arg0: i32) -> (i32, i32, i32) {
    %c0_i32 = arith.constant 0 : i32
    %c0_i32_0 = arith.constant 0 : i32
    %c0_i32_1 = arith.constant 0 : i32
    return %arg0, %c0_i32, %c0_i32_0 : i32, i32, i32
  }
  func.func @transform_1(%arg0: i32) -> (i32, i32) {
    %c0_i32 = arith.constant 0 : i32
    %c0_i32_0 = arith.constant 0 : i32
    %c0_i32_1 = arith.constant 0 : i32
    return %c0_i32, %c0_i32_0 : i32, i32
  }
  func.func @transform_2(%arg0: i32) -> (i32, i32) {
    %c0_i32 = arith.constant 0 : i32
    %c0_i32_0 = arith.constant 0 : i32
    %c0_i32_1 = arith.constant 0 : i32
    return %c0_i32, %c0_i32_0 : i32, i32
  }
  func.func @transform_3(%arg0: i32) -> (i32, i32) {
    %c0_i32 = arith.constant 0 : i32
    %c0_i32_0 = arith.constant 0 : i32
    %c0_i32_1 = arith.constant 0 : i32
    return %c0_i32, %c0_i32_0 : i32, i32
  }
  func.func @transform_4(%arg0: i32) -> (i32, i32, i32) {
    %c0_i32 = arith.constant 0 : i32
    %c0_i32_0 = arith.constant 0 : i32
    %c0_i32_1 = arith.constant 0 : i32
    return %arg0, %c0_i32, %c0_i32_0 : i32, i32, i32
  }
}

</mosaic_0001>

<bundles_post_ra>
// kernel: vision_prompt_learner_forward.1
= control target key start
LH: loop header
LB: loop body
LE: loop exit
PB: predicated region body
PF: predicated region fallthrough
CT: control target
= control target key end

     0   :  { %s488_s15 = smov 0   ;;  %s620_s0 = inlined_call_operand.vmem [shape: f32[2,16,192], index: 0, kind: input, shape index: {}]   ;;  %s621_s1 = inlined_call_operand.vmem [shape: f32[192,128], index: 1, kind: input, shape index: {}]   ;;  %s622_s2 = inlined_call_operand.vmem [shape: f32[1,128], index: 2, kind: input, shape index: {}]   ;;  %s623_s3 = inlined_call_operand.vmem [shape: f32[16,128], index: 3, kind: input, shape index: {}]   ;;  %s624_s4 = inlined_call_operand.vmem [shape: f32[2,17,128], index: 4, kind: output, shape index: {}]  }
   0x1 LB: > { %s371_s16 = sadd.s32 4294967295, %s460_s15   ;;  %p375_p0 = scmp.ge.s32.totalorder %s460_s15, 1  ;;  %s460_s15 = sphi %s488_s15, %s14_s15  }
   0x2   : > { %p162_p1 = scmp.lt.s32.totalorder %s460_s15, 3 }
   0x4   : > { %p163_p2 = pnand %p375_p0, %p162_p1 }
   0x5   : > { %v202_v0 = vld [vmem:[%s621_s1] sm:$0xff] (!%p163_p2)  ;;  %v203_v1 = vld [vmem:[%s621_s1 + $0x8] sm:$0xff] (!%p163_p2)  ;;  %v204_v2 = vld [vmem:[%s621_s1 + $0x10] sm:$0xff] (!%p163_p2)  ;;  %p188_p3 = scmp.lt.s32.totalorder (!%p163_p2), %s371_s16, 1  ;;  %v462_v3 = vmov (!%p163_p2), 0.0|0.0   ;;  %vm226_vm0 = vcmask (!%p163_p2), 523264  }
   0x6   : > { %166 = sbr.rel (%p163_p2) target bundleno = 270 (0x10e), region = 36  ;;  %384 = vmatprep.subr.bf16.mxu0 (!%p163_p2), %v462_v3  ;;  %420 = vmatprep.subr.bf16.mxu1 (!%p163_p2), %v462_v3  ;;  %v385_v4 = vpack.c.bf16 (!%p163_p2), %v203_v1, %v202_v0  ;;  %v205_v5 = vld [vmem:[%s621_s1 + $0x18] sm:$0xff] (!%p163_p2)  ;;  %v206_v7 = vld [vmem:[%s621_s1 + $0x20] sm:$0xff] (!%p163_p2)  ;;  %v207_v8 = vld [vmem:[%s621_s1 + $0x28] sm:$0xff] (!%p163_p2) }
   0x7   : > { %v388_v6 = vpack.c.bf16 (!%p163_p2), %v205_v5, %v204_v2  ;;  %v391_v9 = vpack.c.bf16 (!%p163_p2), %v207_v8, %v206_v7  ;;  %v208_v10 = vld [vmem:[%s621_s1 + $0x30] sm:$0xff] (!%p163_p2)  ;;  %v209_v11 = vld [vmem:[%s621_s1 + $0x38] sm:$0xff] (!%p163_p2)  ;;  %v210_v15 = vld [vmem:[%s621_s1 + $0x40] sm:$0xff] (!%p163_p2) }
   0x8   : > { %386 = vmatpush1.bf16.msra.mxu0 (!%p163_p2), %v385_v4  ;;  %432 = vmatpush1.bf16.msra.mxu1 (!%p163_p2), %v385_v4  ;;  %v394_v14 = vpack.c.bf16 (!%p163_p2), %v209_v11, %v208_v10  ;;  %v211_v16 = vld [vmem:[%s621_s1 + $0x48] sm:$0xff] (!%p163_p2)  ;;  %v212_v18 = vld [vmem:[%s621_s1 + $0x50] sm:$0xff] (!%p163_p2)  ;;  %v213_v19 = vld [vmem:[%s621_s1 + $0x58] sm:$0xff] (!%p163_p2) }
   0x9   : > { %387 = vmatprep.subr.bf16.mxu0 (!%p163_p2), %v462_v3  ;;  %421 = vmatprep.subr.bf16.mxu1 (!%p163_p2), %v462_v3  ;;  %v397_v17 = vpack.c.bf16 (!%p163_p2), %v211_v16, %v210_v15  ;;  %v400_v20 = vpack.c.bf16 (!%p163_p2), %v213_v19, %v212_v18  ;;  %v214_v21 = vld [vmem:[%s621_s1 + $0x60] sm:$0xff] (!%p163_p2)  ;;  %v215_v22 = vld [vmem:[%s621_s1 + $0x68] sm:$0xff] (!%p163_p2)  ;;  %v216_v24 = vld [vmem:[%s621_s1 + $0x70] sm:$0xff] (!%p163_p2) }
   0xa   : > { %v403_v23 = vpack.c.bf16 (!%p163_p2), %v215_v22, %v214_v21  ;;  %v217_v25 = vld [vmem:[%s621_s1 + $0x78] sm:$0xff] (!%p163_p2)  ;;  %v218_v27 = vld [vmem:[%s621_s1 + $0x80] sm:$0xff] (!%p163_p2)  ;;  %v219_v28 = vld [vmem:[%s621_s1 + $0x88] sm:$0xff] (!%p163_p2) }
   0xb   : > { %v406_v26 = vpack.c.bf16 (!%p163_p2), %v217_v25, %v216_v24  ;;  %v409_v29 = vpack.c.bf16 (!%p163_p2), %v219_v28, %v218_v27  ;;  %v220_v30 = vld [vmem:[%s621_s1 + $0x90] sm:$0xff] (!%p163_p2)  ;;  %v221_v31 = vld [vmem:[%s621_s1 + $0x98] sm:$0xff] (!%p163_p2)  ;;  %v222_v33 = vld [vmem:[%s621_s1 + $0xa0] sm:$0xff] (!%p163_p2) }
   0xc   : > { %389 = vmatpush1.bf16.msra.mxu0 (!%p163_p2), %v388_v6  ;;  %433 = vmatpush1.bf16.msra.mxu1 (!%p163_p2), %v388_v6  ;;  %v412_v32 = vpack.c.bf16 (!%p163_p2), %v221_v31, %v220_v30  ;;  %v223_v34 = vld [vmem:[%s621_s1 + $0xa8] sm:$0xff] (!%p163_p2)  ;;  %v224_v36 = vld [vmem:[%s621_s1 + $0xb0] sm:$0xff] (!%p163_p2)  ;;  %v225_v37 = vld [vmem:[%s621_s1 + $0xb8] sm:$0xff] (!%p163_p2) }
   0xd   : > { %s626_s16 = smov (!%p188_p3, %s371_s16), 1  ;;  %390 = vmatprep.subr.bf16.mxu0 %v462_v3  ;;  %422 = vmatprep.subr.bf16.mxu1 %v462_v3  ;;  %v415_v35 = vpack.c.bf16 %v223_v34, %v222_v33  ;;  %v418_v38 = vpack.c.bf16 %v225_v37, %v224_v36  ;;  %v312_v41 = vld [vmem:[%s622_s2] sm:$0x1]  ;;  %v309_v43 = vld [vmem:[%s623_s3 + $0x8] sm:$0xff] }
   0xe   : > { %s383_s29 = sshll.u32 %s626_s16, 5  ;;  %s444_s22 = smul.u32 24, %s626_s16  ;;  %v308_v42 = vld [vmem:[%s623_s3] sm:$0xff] }
   0xf   : > { %s524_s6 = scalar_lea.vmem %s620_s0, %s383_s29 }
  0x10   : > { %v199_v12 = vld [vmem:[%s524_s6 + $0x8] sm:$0xff]  ;;  %v201_v13 = vld [vmem:[%s524_s6 + $0x18] sm:$0xff]  ;;  %392 = vmatpush1.bf16.msra.mxu0 %v391_v9  ;;  %434 = vmatpush1.bf16.msra.mxu1 %v391_v9  ;;  %v198_v39 = vld [vmem:[%s524_s6] sm:$0xff]  ;;  %s197_s25 = scalar_lea.vmem %s624_s4, %s444_s22 }
  0x11   : > { %379 = vmatprep.mubr.msk.f32.mxu0 %vm226_vm0, %v199_v12  ;;  %380 = vmatprep.mubr.msk.f32.mxu1 %vm226_vm0, %v201_v13  ;;  %v200_v40 = vld [vmem:[%s524_s6 + $0x10] sm:$0xff]  ;;  %313 = vst [vmem:[%s197_s25] sm:$0x1] %v312_v41 }
  0x12   : > { %393 = vmatprep.subr.bf16.mxu0 %v462_v3  ;;  %423 = vmatprep.subr.bf16.mxu1 %v462_v3 }
  0x14   : > { %395 = vmatpush1.bf16.msra.mxu0 %v394_v14  ;;  %435 = vmatpush1.bf16.msra.mxu1 %v394_v14 }
  0x15   : > { %396 = vmatprep.subr.bf16.mxu0 %v462_v3  ;;  %424 = vmatprep.subr.bf16.mxu1 %v462_v3 }
  0x18   : > { %398 = vmatpush1.bf16.msra.mxu0 %v397_v17  ;;  %436 = vmatpush1.bf16.msra.mxu1 %v397_v17 }
  0x19   : > { %399 = vmatprep.subr.bf16.mxu0 %v462_v3  ;;  %425 = vmatprep.subr.bf16.mxu1 %v462_v3 }
  0x1c   : > { %401 = vmatpush1.bf16.msra.mxu0 %v400_v20  ;;  %437 = vmatpush1.bf16.msra.mxu1 %v400_v20 }
  0x1d   : > { %402 = vmatprep.subr.bf16.mxu0 %v462_v3  ;;  %426 = vmatprep.subr.bf16.mxu1 %v462_v3 }
  0x20   : > { %404 = vmatpush1.bf16.msra.mxu0 %v403_v23  ;;  %438 = vmatpush1.bf16.msra.mxu1 %v403_v23 }
  0x21   : > { %405 = vmatprep.subr.bf16.mxu0 %v462_v3  ;;  %427 = vmatprep.subr.bf16.mxu1 %v462_v3 }
  0x24   : > { %407 = vmatpush1.bf16.msra.mxu0 %v406_v26  ;;  %439 = vmatpush1.bf16.msra.mxu1 %v406_v26 }
  0x25   : > { %408 = vmatprep.subr.bf16.mxu0 %v462_v3  ;;  %428 = vmatprep.subr.bf16.mxu1 %v462_v3 }
  0x28   : > { %410 = vmatpush1.bf16.msra.mxu0 %v409_v29  ;;  %440 = vmatpush1.bf16.msra.mxu1 %v409_v29 }
  0x29   : > { %411 = vmatprep.subr.bf16.mxu0 %v462_v3  ;;  %429 = vmatprep.subr.bf16.mxu1 %v462_v3 }
  0x2c   : > { %413 = vmatpush1.bf16.msra.mxu0 %v412_v32  ;;  %441 = vmatpush1.bf16.msra.mxu1 %v412_v32 }
  0x2d   : > { %414 = vmatprep.subr.bf16.mxu0 %v462_v3  ;;  %430 = vmatprep.subr.bf16.mxu1 %v462_v3 }
  0x30   : > { %416 = vmatpush1.bf16.msra.mxu0 %v415_v35  ;;  %442 = vmatpush1.bf16.msra.mxu1 %v415_v35 }
  0x31   : > { %417 = vmatprep.subr.bf16.mxu0 %v462_v3  ;;  %431 = vmatprep.subr.bf16.mxu1 %v462_v3 }
  0x34   : > { %419 = vmatpush1.bf16.msra.mxu0 %v418_v38  ;;  %443 = vmatpush1.bf16.msra.mxu1 %v418_v38 }
  0x37   : > { %298 = vmatmul.mubr.f32.vlgmr.msra.gmra.mrb[0].mxu0 %v198_v39  ;;  %303 = vmatmul.mubr.f32.vlgmr.msra.gmra.mrb[0].mxu1 %v200_v40 }
 0x10a   : > { %v299_v44 = vpop.f32.mrb[0].mxu0  ;;  %v304_v45 = vpop.f32.mrb[0].mxu1 }
 0x10b   : > { %v310_v46 = vadd.f32 %v308_v42, %v299_v44  ;;  %v311_v47 = vadd.f32 %v309_v43, %v304_v45  ;;  %v301_v48 = vpop.f32.mrb[1].mxu0  ;;  %v306_v49 = vpop.f32.mrb[1].mxu1 }
 0x10d   : > { %314 = vst [vmem:[%s197_s25 + $0x1] sm:$0xff] %v310_v46  ;;  %315 = vst [vmem:[%s197_s25 + $0x9] sm:$0xff] %v311_v47 }
 0x10e PF: > { %s14_s15 = sadd.s32 1, %s460_s15  }
 0x10f   : > { %p11_p4 = scmp.ge.s32.totalorder %s14_s15, 4  }
 0x111   :  { %13 = sbr.rel (!%p11_p4) target bundleno = 1 (0x1), region = 66 }

</bundles_post_ra>
